<compile_context>
chip_gen: v7x
topology: tpu7x:2x2x1
jax: 0.10.0
libtpu: 0.0.40
codegen_flags: <defaults>
</compile_context>

<pallas_src>
import functools

import jax
import jax.numpy as jnp
from jax.experimental import pallas as pl
from jax.experimental.pallas import tpu as pltpu


def _round_up(n: int, m: int) -> int:
    return ((n + m - 1) // m) * m


def _physical_vmem_bytes() -> int:
    try:
        return int(pltpu.get_tpu_info().vmem_capacity_bytes)
    except Exception:
        return 64 * 1024 * 1024  # conservative (v7x per-core VMEM)


def _supports_single_buffering() -> bool:
    try:
        pl.BlockSpec((8, 128), lambda i: (0, 0), pipeline_mode=pl.Buffered(1))
        return True
    except Exception:
        return False


_SINGLE_BUF = _supports_single_buffering()


def _resident_spec(block_shape, index_map):
    """BlockSpec for a grid-invariant operand; single-buffered when supported."""
    if _SINGLE_BUF:
        return pl.BlockSpec(block_shape, index_map, pipeline_mode=pl.Buffered(1))
    return pl.BlockSpec(block_shape, index_map)


# --------------------------------------------------------------------------
# Kernels
# --------------------------------------------------------------------------
def _mlp_resident_kernel(x_ref, w1_ref, b1_ref, w2_ref, b2_ref, o_ref):
    # hidden = relu(x @ W1 + b1), f32 accumulation on the MXU.
    h = jnp.dot(x_ref[...], w1_ref[...], preferred_element_type=jnp.float32)
    h = jnp.maximum(h + b1_ref[...].astype(jnp.float32), 0.0)
    # out = hidden @ W2 + b2 (hidden fed in the weight dtype, f32 accumulation).
    out = jnp.dot(h.astype(w2_ref.dtype), w2_ref[...],
                  preferred_element_type=jnp.float32)
    o_ref[...] = (out + b2_ref[...].astype(jnp.float32)).astype(o_ref.dtype)


def _mlp_htiled_kernel(x_ref, w1_ref, b1_ref, w2_ref, b2_ref, o_ref, acc_ref):
    # Hidden-dim-tiled path: grid = (batch tiles, hidden chunks).
    # Each hidden chunk's ReLU is exact (uses the full feature contraction),
    # and contributions of the chunks to the output are summed in f32.
    k = pl.program_id(1)

    @pl.when(k == 0)
    def _():
        acc_ref[...] = jnp.zeros_like(acc_ref)

    h = jnp.dot(x_ref[...], w1_ref[...], preferred_element_type=jnp.float32)
    h = jnp.maximum(h + b1_ref[...].astype(jnp.float32), 0.0)
    acc_ref[...] += jnp.dot(h.astype(w2_ref.dtype), w2_ref[...],
                            preferred_element_type=jnp.float32)

    @pl.when(k == pl.num_programs(1) - 1)
    def _():
        o_ref[...] = (acc_ref[...] + b2_ref[...].astype(jnp.float32)).astype(o_ref.dtype)


# --------------------------------------------------------------------------
# Parameter preparation (runs ONCE, outside the forward path)
# --------------------------------------------------------------------------
def prepare_mlp_params(w1, b1, w2, b2):
    """Pad the hidden (lane) dimension to a multiple of 128 once, at init time.

    Zero-padding hidden units is exact: relu(x @ 0 + 0) = 0, and zero rows of
    W2 contribute nothing.  Feature/output dims are left untouched (full-dim
    blocks are legal in Pallas), so the forward path does no per-call padding
    of weights or activations along those dims.
    """
    K, H = w1.shape
    O = w2.shape[1]
    b1 = b1.reshape(1, H)
    b2 = b2.reshape(1, O)
    Hp = _round_up(H, 128)
    if Hp == H:
        return w1, b1, w2, b2
    w1p = jnp.zeros((K, Hp), w1.dtype).at[:, :H].set(w1)
    b1p = jnp.zeros((1, Hp), b1.dtype).at[:, :H].set(b1)
    w2p = jnp.zeros((Hp, O), w2.dtype).at[:H, :].set(w2)
    return w1p, b1p, w2p, b2


# --------------------------------------------------------------------------
# Forward
# --------------------------------------------------------------------------
@functools.partial(jax.jit, static_argnames=("tm", "h_block"))
def mlp_forward(x, w1, b1, w2, b2, *, tm=None, h_block=None):
    """forward(x) = relu(x @ w1 + b1) @ w2 + b2.

    x: (B, K); w1: (K, H); b1: (1, H) or (H,); w2: (H, O); b2: (1, O) or (O,).
    For best performance, pass params through prepare_mlp_params() once.
    """
    B, K = x.shape
    H = w1.shape[1]
    O = w2.shape[1]
    b1 = b1.reshape(1, H)
    b2 = b2.reshape(1, O)
    dtype = x.dtype
    itemsize = jnp.dtype(dtype).itemsize
    w_itemsize = jnp.dtype(w1.dtype).itemsize
    row_align = 16 if dtype == jnp.bfloat16 else 8

    # ---- generation-aware VMEM budget ------------------------------------
    physical_vmem = _physical_vmem_bytes()
    budget = int(0.8 * physical_vmem)  # ~51 MiB on v7x, ~102 MiB on v5e/v6e
    weight_bufs = 1 if _SINGLE_BUF else 2
    resident_w_bytes = weight_bufs * (K * H + H * O + H + O) * w_itemsize

    # ---- pick execution regime -------------------------------------------
    if h_block is not None:
        use_tiled = h_block < H
    else:
        min_tile_bytes = row_align * (2 * (K + O) * itemsize + 4 * H)
        use_tiled = (resident_w_bytes + min_tile_bytes > budget) and (H % 128 == 0)

    if use_tiled:
        if h_block is None:
            # Largest multiple-of-128 divisor of H whose double-buffered
            # W1/b1/W2 chunks use at most ~half the budget.
            h_block = 128
            cand = 128
            while cand <= min(H, 2048):
                if H % cand == 0:
                    chunk = 2 * (K * cand + cand * O + cand) * w_itemsize
                    if chunk <= budget // 2:
                        h_block = cand
                cand += 128
        if H % h_block != 0 or h_block % 128 != 0:
            raise ValueError("h_block must be a multiple of 128 dividing the "
                             "(padded) hidden dim; use prepare_mlp_params().")
    else:
        h_block = H

    # ---- tile-size selection ----------------------------------------------
    if use_tiled:
        chunk_bytes = (2 * (K * h_block + h_block * O + h_block) * w_itemsize
                       + O * w_itemsize)
        per_row = 2 * (K + O) * itemsize + 4 * h_block + 4 * O
        avail = budget - chunk_bytes
    else:
        per_row = 2 * (K + O) * itemsize + 4 * H
        avail = budget - resident_w_bytes

    if tm is None:
        tm_fit = (avail // per_row) if avail > 0 else 0
        tm = max(row_align, (tm_fit // row_align) * row_align)
        # Keep >= 4 batch-grid steps when there is enough batch to split
        # (both v7x TensorCores busy + DMA/compute overlap).
        tm = min(tm, max(row_align, _round_up(-(-B // 4), row_align)), 1024)
    tm = max(row_align, _round_up(tm, row_align))
    tm = min(tm, _round_up(B, row_align))

    # ---- batch padding only when needed ------------------------------------
    B_pad = _round_up(B, tm)
    xp = x if B_pad == B else jnp.zeros((B_pad, K), dtype).at[:B, :].set(x)
    n_b = B_pad // tm

    # ---- advisory cost estimate --------------------------------------------
    flops = 2 * B_pad * H * (K + O)
    if use_tiled:
        w_bytes = n_b * (K * H + H * O + H) * w_itemsize + O * w_itemsize
    else:
        w_bytes = (K * H + H * O + H + O) * w_itemsize
    cost = pl.CostEstimate(
        flops=flops, transcendentals=0,
        bytes_accessed=xp.size * itemsize + w_bytes + B_pad * O * itemsize)

    # ---- VMEM limit ---------------------------------------------------------
    if use_tiled:
        needed = (chunk_bytes + 2 * tm * (K + O) * itemsize
                  + 4 * tm * (h_block + O))
    else:
        needed = (resident_w_bytes + 2 * tm * (K + O) * itemsize + 4 * tm * H)
    vmem_limit = int(min(max(int(1.25 * needed), 32 * 1024 * 1024), budget))

    if not use_tiled:
        out = pl.pallas_call(
            _mlp_resident_kernel,
            out_shape=jax.ShapeDtypeStruct((B_pad, O), dtype),
            grid=(n_b,),
            in_specs=[
                pl.BlockSpec((tm, K), lambda i: (i, 0)),     # x tile (pipelined)
                _resident_spec((K, H), lambda i: (0, 0)),    # W1 resident, 1-buf
                _resident_spec((1, H), lambda i: (0, 0)),    # b1 resident, 1-buf
                _resident_spec((H, O), lambda i: (0, 0)),    # W2 resident, 1-buf
                _resident_spec((1, O), lambda i: (0, 0)),    # b2 resident, 1-buf
            ],
            out_specs=pl.BlockSpec((tm, O), lambda i: (i, 0)),
            compiler_params=pltpu.CompilerParams(
                dimension_semantics=("parallel",),
                vmem_limit_bytes=vmem_limit,
            ),
            cost_estimate=cost,
        )(xp, w1, b1, w2, b2)
    else:
        # TODO(synk): add an O-tiled grid axis for models where even the
        # (h_block, O) W2 chunk / (tm, O) accumulator exceed the VMEM budget.
        n_h = H // h_block
        out = pl.pallas_call(
            _mlp_htiled_kernel,
            out_shape=jax.ShapeDtypeStruct((B_pad, O), dtype),
            grid=(n_b, n_h),
            in_specs=[
                pl.BlockSpec((tm, K), lambda i, k: (i, 0)),        # x (revisited)
                pl.BlockSpec((K, h_block), lambda i, k: (0, k)),   # W1 chunk
                pl.BlockSpec((1, h_block), lambda i, k: (0, k)),   # b1 chunk
                pl.BlockSpec((h_block, O), lambda i, k: (k, 0)),   # W2 chunk
                _resident_spec((1, O), lambda i, k: (0, 0)),       # b2 resident
            ],
            out_specs=pl.BlockSpec((tm, O), lambda i, k: (i, 0)),
            scratch_shapes=[pltpu.VMEM((tm, O), jnp.float32)],
            compiler_params=pltpu.CompilerParams(
                dimension_semantics=("parallel", "arbitrary"),
                vmem_limit_bytes=vmem_limit,
            ),
            cost_estimate=cost,
        )(xp, w1, b1, w2, b2)

    return out if B_pad == B else out[:B, :]


# --------------------------------------------------------------------------
# Init (mimics torch.nn.Linear's U(-1/sqrt(fan_in), 1/sqrt(fan_in)))
# --------------------------------------------------------------------------
def init_mlp_params(key, n_feature, n_hidden, n_output, dtype=jnp.float32):
    k1, k2, k3, k4 = jax.random.split(key, 4)
    bound1 = 1.0 / jnp.sqrt(jnp.array(n_feature, dtype=jnp.float32))
    bound2 = 1.0 / jnp.sqrt(jnp.array(n_hidden, dtype=jnp.float32))
    # stored as (in, out) so the kernel computes x @ W
    w1 = jax.random.uniform(k1, (n_feature, n_hidden), dtype, -bound1, bound1)
    b1 = jax.random.uniform(k2, (1, n_hidden), dtype, -bound1, bound1)
    w2 = jax.random.uniform(k3, (n_hidden, n_output), dtype, -bound2, bound2)
    b2 = jax.random.uniform(k4, (1, n_output), dtype, -bound2, bound2)
    return w1, b1, w2, b2


if __name__ == "__main__":
    key = jax.random.PRNGKey(0)
    k_p1, k_p2, k_x1, k_x2 = jax.random.split(key, 4)

    # --- test 1: tiny MLP, resident-weight path ---------------------------
    n_feature, n_hidden, n_output, batch = 16, 32, 8, 24
    w1, b1, w2, b2 = init_mlp_params(k_p1, n_feature, n_hidden, n_output)
    w1p, b1p, w2p, b2p = prepare_mlp_params(w1, b1, w2, b2)  # pad H once, at init
    x = jax.random.normal(k_x1, (batch, n_feature), jnp.float32)

    out = jax.block_until_ready(mlp_forward(x, w1p, b1p, w2p, b2p, tm=8))
    ref = jnp.maximum(x @ w1 + b1, 0.0) @ w2 + b2
    assert out.shape == (batch, n_output)
    assert jnp.allclose(out, ref, atol=1e-5, rtol=1e-5)

    # --- test 2: force the hidden-tiled (weight-chunked) fallback path -----
    n_feature2, n_hidden2, n_output2, batch2 = 16, 256, 8, 16
    w1, b1, w2, b2 = init_mlp_params(k_p2, n_feature2, n_hidden2, n_output2)
    w1p, b1p, w2p, b2p = prepare_mlp_params(w1, b1, w2, b2)
    x2 = jax.random.normal(k_x2, (batch2, n_feature2), jnp.float32)

    out2 = jax.block_until_ready(mlp_forward(x2, w1p, b1p, w2p, b2p, h_block=128))
    ref2 = jnp.maximum(x2 @ w1 + b1, 0.0) @ w2 + b2
    assert out2.shape == (batch2, n_output2)
    assert jnp.allclose(out2, ref2, atol=1e-4, rtol=1e-4)

    print("KERNEL_OK")
</pallas_src>

<mosaic_0001>
module attributes {stable_mosaic.version = 11 : i64} {
  func.func @_mlp_resident_kernel(%arg0: i32, %arg1: memref<8x16xf32, #tpu.memory_space<vmem>>, %arg2: memref<16x128xf32, #tpu.memory_space<vmem>>, %arg3: memref<1x128xf32, #tpu.memory_space<vmem>>, %arg4: memref<128x8xf32, #tpu.memory_space<vmem>>, %arg5: memref<1x8xf32, #tpu.memory_space<vmem>>, %arg6: memref<8x8xf32, #tpu.memory_space<vmem>>) attributes {dimension_semantics = [#tpu.dimension_semantics<parallel>], iteration_bounds = array<i64: 3>, scalar_prefetch = 0 : i64, scratch_operands = 0 : i64, tpu.core_type = #tpu.core_type<tc>, window_params = [{transform_indices = @transform_0, window_bounds = array<i64: 8, 16>}, {pipeline_mode = #tpu.pipeline_mode<synchronous>, transform_indices = @transform_1, window_bounds = array<i64: 16, 128>}, {pipeline_mode = #tpu.pipeline_mode<synchronous>, transform_indices = @transform_2, window_bounds = array<i64: 1, 128>}, {pipeline_mode = #tpu.pipeline_mode<synchronous>, transform_indices = @transform_3, window_bounds = array<i64: 128, 8>}, {pipeline_mode = #tpu.pipeline_mode<synchronous>, transform_indices = @transform_4, window_bounds = array<i64: 1, 8>}, {transform_indices = @transform_5, window_bounds = array<i64: 8, 8>}]} {
    %c0 = arith.constant 0 : index
    %c0_0 = arith.constant 0 : index
    %0 = vector.load %arg1[%c0, %c0_0] : memref<8x16xf32, #tpu.memory_space<vmem>>, vector<8x16xf32>
    %c0_1 = arith.constant 0 : index
    %c0_2 = arith.constant 0 : index
    %1 = vector.load %arg2[%c0_1, %c0_2] : memref<16x128xf32, #tpu.memory_space<vmem>>, vector<16x128xf32>
    %cst = arith.constant dense<0.000000e+00> : vector<8x128xf32>
    %2 = tpu.matmul %0, %1, %cst {dimension_numbers = #tpu.dot_dimension_numbers<[1], [0], [0], [1], [0, 0, 1, 1], [], []>} : vector<8x16xf32>, vector<16x128xf32>, vector<8x128xf32> -> vector<8x128xf32>
    %c0_3 = arith.constant 0 : index
    %c0_4 = arith.constant 0 : index
    %3 = vector.load %arg3[%c0_3, %c0_4] : memref<1x128xf32, #tpu.memory_space<vmem>>, vector<1x128xf32>
    %4 = vector.broadcast %3 : vector<1x128xf32> to vector<8x128xf32>
    %5 = arith.addf %2, %4 : vector<8x128xf32>
    %cst_5 = arith.constant 0.000000e+00 : f32
    %6 = vector.broadcast %cst_5 : f32 to vector<8x128xf32>
    %7 = arith.maximumf %5, %6 : vector<8x128xf32>
    %c0_6 = arith.constant 0 : index
    %c0_7 = arith.constant 0 : index
    %8 = vector.load %arg4[%c0_6, %c0_7] : memref<128x8xf32, #tpu.memory_space<vmem>>, vector<128x8xf32>
    %cst_8 = arith.constant dense<0.000000e+00> : vector<8x8xf32>
    %9 = tpu.matmul %7, %8, %cst_8 {dimension_numbers = #tpu.dot_dimension_numbers<[1], [0], [0], [1], [0, 0, 1, 1], [], []>} : vector<8x128xf32>, vector<128x8xf32>, vector<8x8xf32> -> vector<8x8xf32>
    %c0_9 = arith.constant 0 : index
    %c0_10 = arith.constant 0 : index
    %10 = vector.load %arg5[%c0_9, %c0_10] : memref<1x8xf32, #tpu.memory_space<vmem>>, vector<1x8xf32>
    %11 = vector.broadcast %10 : vector<1x8xf32> to vector<8x8xf32>
    %12 = arith.addf %9, %11 : vector<8x8xf32>
    %c0_11 = arith.constant 0 : index
    %c0_12 = arith.constant 0 : index
    %13 = vector.load %arg6[%c0_11, %c0_12] : memref<8x8xf32, #tpu.memory_space<vmem>>, vector<8x8xf32>
    tpu.vector_store %arg6[%c0_11, %c0_12], %12 {strides = array<i32>} : memref<8x8xf32, #tpu.memory_space<vmem>>, vector<8x8xf32>,
    return
  }
  func.func @transform_0(%arg0: i32) -> (i32, i32) {
    %c0_i32 = arith.constant 0 : i32
    %c0_i32_0 = arith.constant 0 : i32
    return %arg0, %c0_i32 : i32, i32
  }
  func.func @transform_1(%arg0: i32) -> (i32, i32) {
    %c0_i32 = arith.constant 0 : i32
    %c0_i32_0 = arith.constant 0 : i32
    %c0_i32_1 = arith.constant 0 : i32
    return %c0_i32, %c0_i32_0 : i32, i32
  }
  func.func @transform_2(%arg0: i32) -> (i32, i32) {
    %c0_i32 = arith.constant 0 : i32
    %c0_i32_0 = arith.constant 0 : i32
    %c0_i32_1 = arith.constant 0 : i32
    return %c0_i32, %c0_i32_0 : i32, i32
  }
  func.func @transform_3(%arg0: i32) -> (i32, i32) {
    %c0_i32 = arith.constant 0 : i32
    %c0_i32_0 = arith.constant 0 : i32
    %c0_i32_1 = arith.constant 0 : i32
    return %c0_i32, %c0_i32_0 : i32, i32
  }
  func.func @transform_4(%arg0: i32) -> (i32, i32) {
    %c0_i32 = arith.constant 0 : i32
    %c0_i32_0 = arith.constant 0 : i32
    %c0_i32_1 = arith.constant 0 : i32
    return %c0_i32, %c0_i32_0 : i32, i32
  }
  func.func @transform_5(%arg0: i32) -> (i32, i32) {
    %c0_i32 = arith.constant 0 : i32
    %c0_i32_0 = arith.constant 0 : i32
    return %arg0, %c0_i32 : i32, i32
  }
}

</mosaic_0001>

<bundles_post_ra>
// kernel: mlp_forward.1
= control target key start
LH: loop header
LB: loop body
LE: loop exit
PB: predicated region body
PF: predicated region fallthrough
CT: control target
= control target key end

     0   :  { %s606_s18 = smov 0   ;;  %s690_s0 = inlined_call_operand.vmem [shape: f32[24,16], index: 0, kind: input, shape index: {}]   ;;  %s691_s1 = inlined_call_operand.vmem [shape: f32[16,128], index: 1, kind: input, shape index: {}]   ;;  %s692_s2 = inlined_call_operand.vmem [shape: f32[1,128], index: 2, kind: input, shape index: {}]   ;;  %s693_s3 = inlined_call_operand.vmem [shape: f32[128,8], index: 3, kind: input, shape index: {}]   ;;  %s694_s4 = inlined_call_operand.vmem [shape: f32[1,8], index: 4, kind: input, shape index: {}]   ;;  %s695_s5 = inlined_call_operand.vmem [shape: f32[24,8], index: 5, kind: output, shape index: {}]  }
   0x1 LB: > { %s453_s19 = sadd.s32 4294967295, %s571_s18   ;;  %p457_p0 = scmp.ge.s32.totalorder %s571_s18, 1  ;;  %s571_s18 = sphi %s606_s18, %s15_s18  }
   0x2   : > { %p186_p1 = scmp.lt.s32.totalorder %s571_s18, 4 }
   0x4   : > { %p187_p2 = pnand %p457_p0, %p186_p1 }
   0x5   : > { %v221_v0 = vld [vmem:[%s691_s1] sm:$0xff] (!%p187_p2)  ;;  %v222_v1 = vld [vmem:[%s691_s1 + $0x8] sm:$0xff] (!%p187_p2)  ;;  %p212_p3 = scmp.lt.s32.totalorder (!%p187_p2), %s453_s19, 2  ;;  %v573_v2 = vmov (!%p187_p2), 0.0|0.0   ;;  %vm574_vm0 = vmmov (!%p187_p2), 0   ;;  %v575_v4 = vmov (!%p187_p2), 0.0  }
   0x6   : > { %190 = sbr.rel (%p187_p2) target bundleno = 448 (0x1c0), region = 40  ;;  %527 = vmatprep.subr.bf16.mxu0 (!%p187_p2), %v573_v2  ;;  %v528_v3 = vpack.c.bf16 (!%p187_p2), %v222_v1, %v221_v0  ;;  %489 = vmatprep.mubr.msk.f32.mxu0 (!%p187_p2), %vm574_vm0, %v575_v4  ;;  %v305_v5 = vld [vmem:[%s693_s3] sm:$0xff] (!%p187_p2)  ;;  %v306_v6 = vld [vmem:[%s693_s3 + $0x8] sm:$0xff] (!%p187_p2)  ;;  %v307_v7 = vld [vmem:[%s693_s3 + $0x10] sm:$0xff] (!%p187_p2)  ;;  %vm230_vm1 = vcmask (!%p187_p2), 130048   ;;  %vm398_vm2 = vcmask (!%p187_p2), 64512  }
   0x7   : > { %530 = vmatprep.subr.bf16.mxu1 (!%p187_p2), %v573_v2  ;;  %v531_v8 = vpack.c.bf16 (!%p187_p2), %v306_v6, %v305_v5  ;;  %v308_v9 = vld [vmem:[%s693_s3 + $0x18] sm:$0xff] (!%p187_p2)  ;;  %524 = vmatprep.mubr.msk.f32.mxu1 (!%p187_p2), %vm574_vm0, %v575_v4  ;;  %v309_v11 = vld [vmem:[%s693_s3 + $0x20] sm:$0xff] (!%p187_p2)  ;;  %v310_v12 = vld [vmem:[%s693_s3 + $0x28] sm:$0xff] (!%p187_p2) }
   0x8   : > { %529 = vmatpush3.bf16.msra.mxu0 (!%p187_p2), %v528_v3  ;;  %v534_v10 = vpack.c.bf16 (!%p187_p2), %v308_v9, %v307_v7  ;;  %v537_v14 = vpack.c.bf16 (!%p187_p2), %v310_v12, %v309_v11  ;;  %v311_v15 = vld [vmem:[%s693_s3 + $0x30] sm:$0xff] (!%p187_p2)  ;;  %v312_v16 = vld [vmem:[%s693_s3 + $0x38] sm:$0xff] (!%p187_p2)  ;;  %v313_v18 = vld [vmem:[%s693_s3 + $0x40] sm:$0xff] (!%p187_p2) }
   0x9   : > { %532 = vmatpush3.bf16.msra.mxu1 (!%p187_p2), %v531_v8  ;;  %v540_v17 = vpack.c.bf16 (!%p187_p2), %v312_v16, %v311_v15  ;;  %v314_v19 = vld [vmem:[%s693_s3 + $0x48] sm:$0xff] (!%p187_p2)  ;;  %v315_v21 = vld [vmem:[%s693_s3 + $0x50] sm:$0xff] (!%p187_p2)  ;;  %v316_v22 = vld [vmem:[%s693_s3 + $0x58] sm:$0xff] (!%p187_p2) }
   0xa   : > { %533 = vmatprep.subr.bf16.mxu1 (!%p187_p2), %v573_v2  ;;  %v543_v20 = vpack.c.bf16 (!%p187_p2), %v314_v19, %v313_v18  ;;  %v546_v23 = vpack.c.bf16 (!%p187_p2), %v316_v22, %v315_v21  ;;  %v317_v24 = vld [vmem:[%s693_s3 + $0x60] sm:$0xff] (!%p187_p2)  ;;  %v318_v25 = vld [vmem:[%s693_s3 + $0x68] sm:$0xff] (!%p187_p2)  ;;  %v319_v27 = vld [vmem:[%s693_s3 + $0x70] sm:$0xff] (!%p187_p2) }
   0xb   : > { %v549_v26 = vpack.c.bf16 (!%p187_p2), %v318_v25, %v317_v24  ;;  %v320_v28 = vld [vmem:[%s693_s3 + $0x78] sm:$0xff] (!%p187_p2)  ;;  %v460_v30 = vld [vmem:[%s692_s2] ss:$0 sm:$0xff] (!%p187_p2) }
   0xc   : > { %v552_v29 = vpack.c.bf16 (!%p187_p2), %v320_v28, %v319_v27  ;;  %v462_v35 = vld [vmem:[%s694_s4] ss:$0 sm:$0xff] (!%p187_p2) }
   0xd   : > { %s697_s19 = smov (!%p212_p3, %s453_s19), 2  ;;  %535 = vmatpush3.bf16.msra.mxu1 %v534_v10 }
   0xe   : > { %s458_s7 = sshll.u32 %s697_s19, 3  ;;  %536 = vmatprep.subr.bf16.mxu1 %v573_v2 }
   0xf   : > { %s215_s10 = scalar_lea.vmem %s690_s0, %s458_s7  ;;  %s219_s21 = scalar_lea.vmem %s695_s5, %s458_s7 }
  0x10   : > { %v220_v13 = vld [vmem:[%s215_s10] sm:$0xff] }
  0x11   : > { %490 = vmatmul.mubr.msk.f32.vlgmr.msra.gmra.mrb[0].mxu0 %vm230_vm1, %v220_v13  ;;  %538 = vmatpush3.bf16.msra.mxu1 %v537_v14 }
  0x12   : > { %539 = vmatprep.subr.bf16.mxu1 %v573_v2 }
  0x15   : > { %541 = vmatpush3.bf16.msra.mxu1 %v540_v17 }
  0x16   : > { %542 = vmatprep.subr.bf16.mxu1 %v573_v2 }
  0x19   : > { %544 = vmatpush3.bf16.msra.mxu1 %v543_v20 }
  0x1a   : > { %545 = vmatprep.subr.bf16.mxu1 %v573_v2 }
  0x1d   : > { %547 = vmatpush3.bf16.msra.mxu1 %v546_v23 }
  0x1e   : > { %548 = vmatprep.subr.bf16.mxu1 %v573_v2 }
  0x21   : > { %550 = vmatpush3.bf16.msra.mxu1 %v549_v26 }
  0x22   : > { %551 = vmatprep.subr.bf16.mxu1 %v573_v2 }
  0x25   : > { %553 = vmatpush3.bf16.msra.mxu1 %v552_v29 }
  0xe4   : > { %v300_v31 = vpop.f32.mrb[0].mxu0 }
  0xe5   : > { %v301_v32 = vadd.f32 %v460_v30, %v300_v31  ;;  %v491_v33 = vpop.f32.mrb[1].mxu0 }
  0xe7   : > { %v304_v34 = vmax.f32 %v301_v32, 0.0 }
  0xe9   : > { %525 = vmatmul.mubr.f32.vlgmr.msra.gmra.mrb[0].mxu1 %v304_v34 }
 0x1bc   : > { %v394_v36 = vpop.f32.mrb[0].mxu1 }
 0x1bd   : > { %v395_v37 = vadd.f32 %v462_v35, %v394_v36  ;;  %v526_v38 = vpop.f32.mrb[1].mxu1 }
 0x1bf   : > { %399 = vst.msk [vmem:[%s219_s21] sm:$0xff] %vm398_vm2, %v395_v37 }
 0x1c0 PF: > { %s15_s18 = sadd.s32 1, %s571_s18  }
 0x1c1   : > { %p12_p4 = scmp.ge.s32.totalorder %s15_s18, 5  }
 0x1c3   :  { %14 = sbr.rel (!%p12_p4) target bundleno = 1 (0x1), region = 70 }

</bundles_post_ra>
